<compile_context>
chip_gen: v7x
topology: tpu7x:2x2x1
jax: 0.10.0
libtpu: 0.0.40
codegen_flags: <defaults>
</compile_context>

<pallas_src>
import functools

import jax
import jax.numpy as jnp
import numpy as np
from jax.experimental import pallas as pl
from jax.experimental.pallas import tpu as pltpu

LN_EPS = 1e-6  # T5 config.layer_norm_epsilon default


def _round_up(x, m):
    return ((x + m - 1) // m) * m


def _pad2(a, rows, cols):
    """Zero-pad a 2-D array up to (rows, cols)."""
    pr, pc = rows - a.shape[0], cols - a.shape[1]
    if pr == 0 and pc == 0:
        return a
    return jnp.pad(a, ((0, pr), (0, pc)))


@functools.lru_cache(maxsize=None)
def _vmem_limit_bytes():
    """Generation-aware scoped-VMEM budget with headroom for the compiler."""
    cap = None
    try:
        cap = getattr(pltpu.get_tpu_info(), "vmem_capacity_bytes", None)
    except Exception:  # pragma: no cover - query unavailable
        cap = None
    if not cap:
        return 48 * 1024 * 1024                    # safe everywhere
    if cap <= 64 * 1024 * 1024:                    # v7x: 64 MiB per TC
        return int(cap * 0.75)                     # ~48 MiB, leave headroom
    return min(int(cap * 0.85), 112 * 1024 * 1024)  # v5e/v6e: 128 MiB


# ----------------------------------------------------------------------------
# Kernel A: decode_latent + grow_sequence fused, tiled over output columns.
#   latent [B, L] -> [B, 100*S]
# The tiny first matmul ([B,L]x[L,10S]) is recomputed per column tile (hidden
# under the w2 DMA); the big weight w2 (10S x 100S) is streamed tile-by-tile
# ("parallel", pipelined). Throughput is w2-streaming (HBM) bound, so the
# column tile is sized so each streamed w2 block is >= ~2 MiB.
# ----------------------------------------------------------------------------
def _decode_kernel(lat_ref, w1_ref, b1_ref, w2_ref, b2_ref, out_ref):
    x = lat_ref[...]                                                   # bf16 [B, L]
    h = jnp.dot(x, w1_ref[...], preferred_element_type=jnp.float32)   # f32 [B, H1]
    h = (h + b1_ref[...]).astype(jnp.bfloat16)                         # bias in f32
    y = jnp.dot(h, w2_ref[...], preferred_element_type=jnp.float32)   # f32 [B, TN]
    out_ref[...] = (y + b2_ref[...]).astype(out_ref.dtype)


def decode_latent_grow_sequence(latent, w1, b1, w2, b2):
    B, L = latent.shape
    H1, H2 = w2.shape
    assert w1.shape == (L, H1)

    # Column tile: >= ~2 MiB of streamed w2 per block (capped at 16K lanes
    # and at the 128-aligned full output width).
    target = max(512, (2 << 20) // max(H1 * 2, 1))
    n_tile = _round_up(min(target, 16 * 1024), 128)
    n_tile = min(n_tile, _round_up(H2, 128))
    H2p = _round_up(H2, n_tile)

    lat = latent.astype(jnp.bfloat16)
    w1b = w1.astype(jnp.bfloat16)                            # (L, H1) unpadded
    b1f = b1.reshape(1, -1).astype(jnp.float32)              # (1, H1) unpadded
    w2p = _pad2(w2, H1, H2p).astype(jnp.bfloat16)            # pad output cols only
    b2p = _pad2(b2.reshape(1, -1), 1, H2p).astype(jnp.float32)

    n_tiles = H2p // n_tile
    flops = 2 * B * L * H1 * n_tiles + 2 * B * H1 * H2p
    bytes_accessed = (lat.size * 2 + w1b.size * 2 + b1f.size * 4 +
                      w2p.size * 2 + b2p.size * 4 + B * H2p * 2)

    out = pl.pallas_call(
        _decode_kernel,
        out_shape=jax.ShapeDtypeStruct((B, H2p), jnp.bfloat16),
        grid=(n_tiles,),
        in_specs=[
            pl.BlockSpec((B, L), lambda i: (0, 0)),          # resident
            pl.BlockSpec((L, H1), lambda i: (0, 0)),         # resident
            pl.BlockSpec((1, H1), lambda i: (0, 0)),         # resident
            pl.BlockSpec((H1, n_tile), lambda i: (0, i)),    # streamed
            pl.BlockSpec((1, n_tile), lambda i: (0, i)),     # streamed
        ],
        out_specs=pl.BlockSpec((B, n_tile), lambda i: (0, i)),
        compiler_params=pltpu.CompilerParams(
            dimension_semantics=("parallel",),
            vmem_limit_bytes=_vmem_limit_bytes()),
        cost_estimate=pl.CostEstimate(
            flops=flops, transcendentals=0, bytes_accessed=bytes_accessed),
    )(lat, w1b, b1f, w2p, b2p)
    return out[:, :H2]                                       # bf16 [B, 100*S]


# ----------------------------------------------------------------------------
# Kernel B: grow_tokens + T5LayerFF fused.
#   grid = (row_tiles, dff_tiles); the dff axis is an "arbitrary" reduction
#   axis with an output-resident f32 accumulator. At k==0 we compute
#   h = x@wg + bg once, fold it (the residual) into the accumulator, and
#   cache the RMS-normed activation in a bf16 scratch reused for every k.
# ----------------------------------------------------------------------------
def _grow_ff_kernel(x_ref, wg_ref, bg_ref, lnw_ref, wi_ref, wo_ref, o_ref,
                    acc_scr, normed_scr, *, eps, dm_true):
    k = pl.program_id(1)

    @pl.when(k == 0)
    def _():
        # grow_tokens: bf16 MXU matmul, f32 accumulation + f32 bias.
        h = jnp.dot(x_ref[...], wg_ref[...],
                    preferred_element_type=jnp.float32)
        h = h + bg_ref[...]
        acc_scr[...] = h                       # residual folded into accumulator
        # T5LayerNorm (RMS, f32 stats), computed ONCE per row tile. Padded dm
        # columns of h are exactly 0, so the sum equals the true sum; divide
        # by the real dim_m.
        var = jnp.sum(h * h, axis=-1, keepdims=True) * (1.0 / dm_true)
        normed_scr[...] = (h * jax.lax.rsqrt(var + eps)
                           * lnw_ref[...]).astype(jnp.bfloat16)

    # DenseReluDense (no biases, dropout=0), dff tiled along grid axis 1.
    f = jnp.dot(normed_scr[...], wi_ref[...],
                preferred_element_type=jnp.float32)
    f = jnp.maximum(f, 0.0).astype(jnp.bfloat16)             # relu, bf16 for MXU
    acc_scr[...] += jnp.dot(f, wo_ref[...],
                            preferred_element_type=jnp.float32)

    @pl.when(k == pl.num_programs(1) - 1)
    def _():
        o_ref[...] = acc_scr[...].astype(o_ref.dtype)


def _fit_b_tiles(row_tile, dff_tile, F, dmp, budget):
    """Shrink (row_tile, dff_tile) until the live VMEM buffers fit."""
    def need(rt, dt):
        return (2 * rt * F * 2            # x tile (bf16, double-buffered)
                + 2 * F * dmp * 2         # wg (constant block)
                + 4 * dmp * 4             # bg + lnw
                + 4 * dmp * dt * 2        # wi + wo tiles (double-buffered)
                + 2 * rt * dmp * 4        # output tile (f32)
                + rt * dmp * 6)           # scratch: f32 acc + bf16 normed
    while need(row_tile, dff_tile) > budget:
        if dff_tile > 256:
            dff_tile //= 2
        elif row_tile > 64:
            row_tile = max(64, row_tile // 2)
        else:
            break
    return row_tile, dff_tile


def grow_tokens_t5_ff(x_rows, wg, bg, ln_w, wi, wo, *,
                      row_tile=1024, dff_tile=2048):
    R, F = x_rows.shape          # R = B*S, F = 100 (kept unpadded: full-extent)
    dm = wg.shape[1]
    dff = wi.shape[1]

    dmp = _round_up(dm, 128)                      # lane-dense feature/output dim
    vmem_budget = _vmem_limit_bytes()

    row_tile = min(_round_up(row_tile, 8), _round_up(R, 8))
    dff_tile = min(_round_up(dff_tile, 128), _round_up(dff, 128))
    row_tile, dff_tile = _fit_b_tiles(row_tile, dff_tile, F, dmp, vmem_budget)

    # Keep >=2 "parallel" row steps when tiles stay large enough, so both v7x
    # TensorCores get work; single-TC chips are unaffected by the split.
    if _round_up(R, row_tile) == row_tile and row_tile >= 256:
        row_tile = _round_up((row_tile + 1) // 2, 8)

    Rp = _round_up(R, row_tile)
    dffp = _round_up(dff, dff_tile)
    n_row = Rp // row_tile
    n_dff = dffp // dff_tile

    xp = _pad2(x_rows, Rp, F).astype(jnp.bfloat16)           # pad rows only
    wgp = _pad2(wg, F, dmp).astype(jnp.bfloat16)
    bgp = _pad2(bg.reshape(1, -1), 1, dmp).astype(jnp.float32)
    lnp = _pad2(ln_w.reshape(1, -1), 1, dmp).astype(jnp.float32)
    wip = _pad2(wi, dmp, dffp).astype(jnp.bfloat16)
    wop = _pad2(wo, dffp, dmp).astype(jnp.bfloat16)

    flops = 2 * Rp * (F * dmp + dmp * dffp + dffp * dmp)
    bytes_accessed = (xp.size * 2 + wgp.size * 2
                      + (wip.size + wop.size) * 2 * n_row
                      + (bgp.size + lnp.size) * 4 + Rp * dmp * 4)

    kern = functools.partial(_grow_ff_kernel, eps=LN_EPS, dm_true=float(dm))
    out = pl.pallas_call(
        kern,
        out_shape=jax.ShapeDtypeStruct((Rp, dmp), jnp.float32),
        grid=(n_row, n_dff),
        in_specs=[
            pl.BlockSpec((row_tile, F), lambda i, k: (i, 0)),
            pl.BlockSpec((F, dmp), lambda i, k: (0, 0)),
            pl.BlockSpec((1, dmp), lambda i, k: (0, 0)),
            pl.BlockSpec((1, dmp), lambda i, k: (0, 0)),
            pl.BlockSpec((dmp, dff_tile), lambda i, k: (0, k)),
            pl.BlockSpec((dff_tile, dmp), lambda i, k: (k, 0)),
        ],
        out_specs=pl.BlockSpec((row_tile, dmp), lambda i, k: (i, 0)),
        scratch_shapes=[
            pltpu.VMEM((row_tile, dmp), jnp.float32),   # residual + FF accumulator
            pltpu.VMEM((row_tile, dmp), jnp.bfloat16),  # cached RMS-normed h
        ],
        compiler_params=pltpu.CompilerParams(
            dimension_semantics=("parallel", "arbitrary"),
            vmem_limit_bytes=vmem_budget),
        cost_estimate=pl.CostEstimate(
            flops=flops, transcendentals=Rp, bytes_accessed=bytes_accessed),
    )(xp, wgp, bgp, lnp, wip, wop)
    return out[:R, :dm]


# ----------------------------------------------------------------------------
# Full module forward (glue in plain JAX: slicing / reshape only)
# ----------------------------------------------------------------------------
def latent_decoder_forward(latent, params):
    B = latent.shape[0]
    dim_m = params["w_grow_tok"].shape[1]
    seq = decode_latent_grow_sequence(
        latent, params["w_dec"], params["b_dec"],
        params["w_grow_seq"], params["b_grow_seq"])          # bf16 [B, 100*S]
    rows = seq.reshape(B, -1, 100).reshape(-1, 100)          # bf16 [B*S, 100]
    out = grow_tokens_t5_ff(
        rows, params["w_grow_tok"], params["b_grow_tok"],
        params["ln_w"], params["wi"], params["wo"])          # f32 [B*S, dim_m]
    return out.reshape(B, -1, dim_m)                         # [B, S, dim_m]


# Pure-JAX (f32) reference for a correctness check.
def reference_forward(latent, p):
    B = latent.shape[0]
    h = latent @ p["w_dec"] + p["b_dec"][0]
    h = h @ p["w_grow_seq"] + p["b_grow_seq"][0]
    h = h.reshape(B, -1, 100)
    h = h @ p["w_grow_tok"] + p["b_grow_tok"][0]
    var = jnp.mean(h * h, axis=-1, keepdims=True)
    normed = h * jax.lax.rsqrt(var + LN_EPS) * p["ln_w"][0]
    ff = jnp.maximum(normed @ p["wi"], 0.0) @ p["wo"]
    return h + ff


def init_params(key, latent_size, set_input_size, dim_m, d_ff):
    def linear(k, fan_in, fan_out, bias=True):
        kw, kb = jax.random.split(k)
        bound = 1.0 / np.sqrt(fan_in)
        w = jax.random.uniform(kw, (fan_in, fan_out), jnp.float32, -bound, bound)
        b = (jax.random.uniform(kb, (1, fan_out), jnp.float32, -bound, bound)
             if bias else None)
        return w, b

    ks = jax.random.split(key, 5)
    w_dec, b_dec = linear(ks[0], latent_size, 10 * set_input_size)
    w_gs, b_gs = linear(ks[1], 10 * set_input_size, 100 * set_input_size)
    w_gt, b_gt = linear(ks[2], 100, dim_m)
    wi, _ = linear(ks[3], dim_m, d_ff, bias=False)   # T5 dense layers: no bias
    wo, _ = linear(ks[4], d_ff, dim_m, bias=False)
    ln_w = jnp.ones((1, dim_m), jnp.float32)          # T5LayerNorm weight init = 1
    return dict(w_dec=w_dec, b_dec=b_dec, w_grow_seq=w_gs, b_grow_seq=b_gs,
                w_grow_tok=w_gt, b_grow_tok=b_gt, ln_w=ln_w, wi=wi, wo=wo)


if __name__ == "__main__":
    # Small, forward-consistent shapes.
    batch = 2
    latent_size = 32
    set_input_size = 8     # -> sequence length after view(B, -1, 100)
    dim_m = 64             # T5 d_model
    d_ff = 128             # T5 d_ff

    key = jax.random.PRNGKey(0)
    k_param, k_in = jax.random.split(key)
    params = init_params(k_param, latent_size, set_input_size, dim_m, d_ff)
    latent = jax.random.normal(k_in, (batch, latent_size), jnp.float32)

    fwd = jax.jit(latent_decoder_forward)
    out = jax.block_until_ready(fwd(latent, params))

    ref = jax.block_until_ready(reference_forward(latent, params))
    assert out.shape == (batch, set_input_size, dim_m), out.shape
    # bf16 MXU operands (f32 accumulation) vs. pure-f32 reference -> 2e-2 tol.
    np.testing.assert_allclose(np.asarray(out), np.asarray(ref),
                               rtol=2e-2, atol=2e-2)
    print("KERNEL_OK")
</pallas_src>

<mosaic_0001>
module attributes {stable_mosaic.version = 11 : i64} {
  func.func @_decode_kernel(%arg0: i32, %arg1: memref<2x32xbf16, #tpu.memory_space<vmem>>, %arg2: memref<32x80xbf16, #tpu.memory_space<vmem>>, %arg3: memref<1x80xf32, #tpu.memory_space<vmem>>, %arg4: memref<80x896xbf16, #tpu.memory_space<vmem>>, %arg5: memref<1x896xf32, #tpu.memory_space<vmem>>, %arg6: memref<2x896xbf16, #tpu.memory_space<vmem>>) attributes {dimension_semantics = [#tpu.dimension_semantics<parallel>], iteration_bounds = array<i64: 1>, scalar_prefetch = 0 : i64, scratch_operands = 0 : i64, tpu.core_type = #tpu.core_type<tc>, window_params = [{pipeline_mode = #tpu.pipeline_mode<synchronous>, transform_indices = @transform_0, window_bounds = array<i64: 2, 32>}, {pipeline_mode = #tpu.pipeline_mode<synchronous>, transform_indices = @transform_1, window_bounds = array<i64: 32, 80>}, {pipeline_mode = #tpu.pipeline_mode<synchronous>, transform_indices = @transform_2, window_bounds = array<i64: 1, 80>}, {transform_indices = @transform_3, window_bounds = array<i64: 80, 896>}, {transform_indices = @transform_4, window_bounds = array<i64: 1, 896>}, {transform_indices = @transform_5, window_bounds = array<i64: 2, 896>}]} {
    %c0 = arith.constant 0 : index
    %c0_0 = arith.constant 0 : index
    %0 = vector.load %arg1[%c0, %c0_0] : memref<2x32xbf16, #tpu.memory_space<vmem>>, vector<2x32xbf16>
    %c0_1 = arith.constant 0 : index
    %c0_2 = arith.constant 0 : index
    %1 = vector.load %arg2[%c0_1, %c0_2] : memref<32x80xbf16, #tpu.memory_space<vmem>>, vector<32x80xbf16>
    %cst = arith.constant dense<0.000000e+00> : vector<2x80xf32>
    %2 = tpu.matmul %0, %1, %cst {dimension_numbers = #tpu.dot_dimension_numbers<[1], [0], [0], [1], [0, 0, 1, 1], [], []>} : vector<2x32xbf16>, vector<32x80xbf16>, vector<2x80xf32> -> vector<2x80xf32>
    %c0_3 = arith.constant 0 : index
    %c0_4 = arith.constant 0 : index
    %3 = vector.load %arg3[%c0_3, %c0_4] : memref<1x80xf32, #tpu.memory_space<vmem>>, vector<1x80xf32>
    %4 = vector.broadcast %3 : vector<1x80xf32> to vector<2x80xf32>
    %5 = arith.addf %2, %4 : vector<2x80xf32>
    %6 = arith.truncf %5 : vector<2x80xf32> to vector<2x80xbf16>
    %c0_5 = arith.constant 0 : index
    %c0_6 = arith.constant 0 : index
    %7 = vector.load %arg4[%c0_5, %c0_6] : memref<80x896xbf16, #tpu.memory_space<vmem>>, vector<80x896xbf16>
    %cst_7 = arith.constant dense<0.000000e+00> : vector<2x896xf32>
    %8 = tpu.matmul %6, %7, %cst_7 {dimension_numbers = #tpu.dot_dimension_numbers<[1], [0], [0], [1], [0, 0, 1, 1], [], []>} : vector<2x80xbf16>, vector<80x896xbf16>, vector<2x896xf32> -> vector<2x896xf32>
    %c0_8 = arith.constant 0 : index
    %c0_9 = arith.constant 0 : index
    %9 = vector.load %arg5[%c0_8, %c0_9] : memref<1x896xf32, #tpu.memory_space<vmem>>, vector<1x896xf32>
    %10 = vector.broadcast %9 : vector<1x896xf32> to vector<2x896xf32>
    %11 = arith.addf %8, %10 : vector<2x896xf32>
    %12 = arith.truncf %11 : vector<2x896xf32> to vector<2x896xbf16>
    %c0_10 = arith.constant 0 : index
    %c0_11 = arith.constant 0 : index
    %13 = vector.load %arg6[%c0_10, %c0_11] : memref<2x896xbf16, #tpu.memory_space<vmem>>, vector<2x896xbf16>
    tpu.vector_store %arg6[%c0_10, %c0_11], %12 {strides = array<i32>} : memref<2x896xbf16, #tpu.memory_space<vmem>>, vector<2x896xbf16>,
    return
  }
  func.func @transform_0(%arg0: i32) -> (i32, i32) {
    %c0_i32 = arith.constant 0 : i32
    %c0_i32_0 = arith.constant 0 : i32
    %c0_i32_1 = arith.constant 0 : i32
    return %c0_i32, %c0_i32_0 : i32, i32
  }
  func.func @transform_1(%arg0: i32) -> (i32, i32) {
    %c0_i32 = arith.constant 0 : i32
    %c0_i32_0 = arith.constant 0 : i32
    %c0_i32_1 = arith.constant 0 : i32
    return %c0_i32, %c0_i32_0 : i32, i32
  }
  func.func @transform_2(%arg0: i32) -> (i32, i32) {
    %c0_i32 = arith.constant 0 : i32
    %c0_i32_0 = arith.constant 0 : i32
    %c0_i32_1 = arith.constant 0 : i32
    return %c0_i32, %c0_i32_0 : i32, i32
  }
  func.func @transform_3(%arg0: i32) -> (i32, i32) {
    %c0_i32 = arith.constant 0 : i32
    %c0_i32_0 = arith.constant 0 : i32
    return %c0_i32, %arg0 : i32, i32
  }
  func.func @transform_4(%arg0: i32) -> (i32, i32) {
    %c0_i32 = arith.constant 0 : i32
    %c0_i32_0 = arith.constant 0 : i32
    return %c0_i32, %arg0 : i32, i32
  }
  func.func @transform_5(%arg0: i32) -> (i32, i32) {
    %c0_i32 = arith.constant 0 : i32
    %c0_i32_0 = arith.constant 0 : i32
    return %c0_i32, %arg0 : i32, i32
  }
}

module attributes {stable_mosaic.version = 11 : i64} {
  func.func @_grow_ff_kernel(%arg0: i32, %arg1: i32, %arg2: memref<16x100xbf16, #tpu.memory_space<vmem>>, %arg3: memref<100x128xbf16, #tpu.memory_space<vmem>>, %arg4: memref<1x128xf32, #tpu.memory_space<vmem>>, %arg5: memref<1x128xf32, #tpu.memory_space<vmem>>, %arg6: memref<128x128xbf16, #tpu.memory_space<vmem>>, %arg7: memref<128x128xbf16, #tpu.memory_space<vmem>>, %arg8: memref<16x128xf32, #tpu.memory_space<vmem>>, %arg9: memref<16x128xf32, #tpu.memory_space<vmem>>, %arg10: memref<16x128xbf16, #tpu.memory_space<vmem>>) attributes {dimension_semantics = [#tpu.dimension_semantics<parallel>, #tpu.dimension_semantics<arbitrary>], iteration_bounds = array<i64: 1, 1>, scalar_prefetch = 0 : i64, scratch_operands = 2 : i64, tpu.core_type = #tpu.core_type<tc>, window_params = [{transform_indices = @transform_0, window_bounds = array<i64: 16, 100>}, {pipeline_mode = #tpu.pipeline_mode<synchronous>, transform_indices = @transform_1, window_bounds = array<i64: 100, 128>}, {pipeline_mode = #tpu.pipeline_mode<synchronous>, transform_indices = @transform_2, window_bounds = array<i64: 1, 128>}, {pipeline_mode = #tpu.pipeline_mode<synchronous>, transform_indices = @transform_3, window_bounds = array<i64: 1, 128>}, {transform_indices = @transform_4, window_bounds = array<i64: 128, 128>}, {transform_indices = @transform_5, window_bounds = array<i64: 128, 128>}, {transform_indices = @transform_6, window_bounds = array<i64: 16, 128>}]} {
    %c0_i32 = arith.constant 0 : i32
    %0 = arith.cmpi eq, %arg1, %c0_i32 : i32
    %1 = arith.extui %0 : i1 to i32
    %c0_i32_0 = arith.constant 0 : i32
    %2 = arith.cmpi ne, %1, %c0_i32_0 : i32
    scf.if %2 {
      %c0_14 = arith.constant 0 : index
      %c0_15 = arith.constant 0 : index
      %17 = vector.load %arg2[%c0_14, %c0_15] : memref<16x100xbf16, #tpu.memory_space<vmem>>, vector<16x100xbf16>
      %c0_16 = arith.constant 0 : index
      %c0_17 = arith.constant 0 : index
      %18 = vector.load %arg3[%c0_16, %c0_17] : memref<100x128xbf16, #tpu.memory_space<vmem>>, vector<100x128xbf16>
      %cst_18 = arith.constant dense<0.000000e+00> : vector<16x128xf32>
      %19 = tpu.matmul %17, %18, %cst_18 {dimension_numbers = #tpu.dot_dimension_numbers<[1], [0], [0], [1], [0, 0, 1, 1], [], []>} : vector<16x100xbf16>, vector<100x128xbf16>, vector<16x128xf32> -> vector<16x128xf32>
      %c0_19 = arith.constant 0 : index
      %c0_20 = arith.constant 0 : index
      %20 = vector.load %arg4[%c0_19, %c0_20] : memref<1x128xf32, #tpu.memory_space<vmem>>, vector<1x128xf32>
      %21 = vector.broadcast %20 : vector<1x128xf32> to vector<16x128xf32>
      %22 = arith.addf %19, %21 : vector<16x128xf32>
      %c0_21 = arith.constant 0 : index
      %c0_22 = arith.constant 0 : index
      %23 = vector.load %arg9[%c0_21, %c0_22] : memref<16x128xf32, #tpu.memory_space<vmem>>, vector<16x128xf32>
      tpu.vector_store %arg9[%c0_21, %c0_22], %22 {strides = array<i32>} : memref<16x128xf32, #tpu.memory_space<vmem>>, vector<16x128xf32>,
      %24 = arith.mulf %22, %22 : vector<16x128xf32>
      %cst_23 = arith.constant dense<0.000000e+00> : vector<16xf32>
      %25 = vector.multi_reduction <add>, %24, %cst_23 [1] : vector<16x128xf32> to vector<16xf32>
      %26 = vector.shape_cast %25 : vector<16xf32> to vector<16x1xf32>
      %cst_24 = arith.constant 1.562500e-02 : f32
      %27 = vector.broadcast %cst_24 : f32 to vector<16x1xf32>
      %28 = arith.mulf %26, %27 : vector<16x1xf32>
      %cst_25 = arith.constant 9.99999997E-7 : f32
      %29 = vector.broadcast %cst_25 : f32 to vector<16x1xf32>
      %30 = arith.addf %28, %29 : vector<16x1xf32>
      %31 = math.rsqrt %30 : vector<16x1xf32>
      %32 = vector.broadcast %31 : vector<16x1xf32> to vector<16x128xf32>
      %33 = arith.mulf %22, %32 : vector<16x128xf32>
      %c0_26 = arith.constant 0 : index
      %c0_27 = arith.constant 0 : index
      %34 = vector.load %arg5[%c0_26, %c0_27] : memref<1x128xf32, #tpu.memory_space<vmem>>, vector<1x128xf32>
      %35 = vector.broadcast %34 : vector<1x128xf32> to vector<16x128xf32>
      %36 = arith.mulf %33, %35 : vector<16x128xf32>
      %37 = arith.truncf %36 : vector<16x128xf32> to vector<16x128xbf16>
      %c0_28 = arith.constant 0 : index
      %c0_29 = arith.constant 0 : index
      %38 = vector.load %arg10[%c0_28, %c0_29] : memref<16x128xbf16, #tpu.memory_space<vmem>>, vector<16x128xbf16>
      tpu.vector_store %arg10[%c0_28, %c0_29], %37 {strides = array<i32>} : memref<16x128xbf16, #tpu.memory_space<vmem>>, vector<16x128xbf16>,
    } else {
    }
    %c0 = arith.constant 0 : index
    %c0_1 = arith.constant 0 : index
    %3 = vector.load %arg10[%c0, %c0_1] : memref<16x128xbf16, #tpu.memory_space<vmem>>, vector<16x128xbf16>
    %c0_2 = arith.constant 0 : index
    %c0_3 = arith.constant 0 : index
    %4 = vector.load %arg6[%c0_2, %c0_3] : memref<128x128xbf16, #tpu.memory_space<vmem>>, vector<128x128xbf16>
    %cst = arith.constant dense<0.000000e+00> : vector<16x128xf32>
    %5 = tpu.matmul %3, %4, %cst {dimension_numbers = #tpu.dot_dimension_numbers<[1], [0], [0], [1], [0, 0, 1, 1], [], []>} : vector<16x128xbf16>, vector<128x128xbf16>, vector<16x128xf32> -> vector<16x128xf32>
    %cst_4 = arith.constant 0.000000e+00 : f32
    %6 = vector.broadcast %cst_4 : f32 to vector<16x128xf32>
    %7 = arith.maximumf %5, %6 : vector<16x128xf32>
    %8 = arith.truncf %7 : vector<16x128xf32> to vector<16x128xbf16>
    %c0_5 = arith.constant 0 : index
    %c0_6 = arith.constant 0 : index
    %9 = vector.load %arg9[%c0_5, %c0_6] : memref<16x128xf32, #tpu.memory_space<vmem>>, vector<16x128xf32>
    %c0_7 = arith.constant 0 : index
    %c0_8 = arith.constant 0 : index
    %10 = vector.load %arg7[%c0_7, %c0_8] : memref<128x128xbf16, #tpu.memory_space<vmem>>, vector<128x128xbf16>
    %cst_9 = arith.constant dense<0.000000e+00> : vector<16x128xf32>
    %11 = tpu.matmul %8, %10, %cst_9 {dimension_numbers = #tpu.dot_dimension_numbers<[1], [0], [0], [1], [0, 0, 1, 1], [], []>} : vector<16x128xbf16>, vector<128x128xbf16>, vector<16x128xf32> -> vector<16x128xf32>
    %12 = arith.addf %9, %11 : vector<16x128xf32>
    %c0_10 = arith.constant 0 : index
    %c0_11 = arith.constant 0 : index
    %13 = vector.load %arg9[%c0_10, %c0_11] : memref<16x128xf32, #tpu.memory_space<vmem>>, vector<16x128xf32>
    tpu.vector_store %arg9[%c0_10, %c0_11], %12 {strides = array<i32>} : memref<16x128xf32, #tpu.memory_space<vmem>>, vector<16x128xf32>,
    %c0_i32_12 = arith.constant 0 : i32
    %14 = arith.cmpi eq, %arg1, %c0_i32_12 : i32
    %15 = arith.extui %14 : i1 to i32
    %c0_i32_13 = arith.constant 0 : i32
    %16 = arith.cmpi ne, %15, %c0_i32_13 : i32
    scf.if %16 {
      %c0_14 = arith.constant 0 : index
      %c0_15 = arith.constant 0 : index
      %17 = vector.load %arg9[%c0_14, %c0_15] : memref<16x128xf32, #tpu.memory_space<vmem>>, vector<16x128xf32>
      %c0_16 = arith.constant 0 : index
      %c0_17 = arith.constant 0 : index
      %18 = vector.load %arg8[%c0_16, %c0_17] : memref<16x128xf32, #tpu.memory_space<vmem>>, vector<16x128xf32>
      tpu.vector_store %arg8[%c0_16, %c0_17], %17 {strides = array<i32>} : memref<16x128xf32, #tpu.memory_space<vmem>>, vector<16x128xf32>,
    } else {
    }
    return
  }
  func.func @transform_0(%arg0: i32, %arg1: i32) -> (i32, i32) {
    %c0_i32 = arith.constant 0 : i32
    %c0_i32_0 = arith.constant 0 : i32
    return %arg0, %c0_i32 : i32, i32
  }
  func.func @transform_1(%arg0: i32, %arg1: i32) -> (i32, i32) {
    %c0_i32 = arith.constant 0 : i32
    %c0_i32_0 = arith.constant 0 : i32
    %c0_i32_1 = arith.constant 0 : i32
    return %c0_i32, %c0_i32_0 : i32, i32
  }
  func.func @transform_2(%arg0: i32, %arg1: i32) -> (i32, i32) {
    %c0_i32 = arith.constant 0 : i32
    %c0_i32_0 = arith.constant 0 : i32
    %c0_i32_1 = arith.constant 0 : i32
    return %c0_i32, %c0_i32_0 : i32, i32
  }
  func.func @transform_3(%arg0: i32, %arg1: i32) -> (i32, i32) {
    %c0_i32 = arith.constant 0 : i32
    %c0_i32_0 = arith.constant 0 : i32
    %c0_i32_1 = arith.constant 0 : i32
    return %c0_i32, %c0_i32_0 : i32, i32
  }
  func.func @transform_4(%arg0: i32, %arg1: i32) -> (i32, i32) {
    %c0_i32 = arith.constant 0 : i32
    %c0_i32_0 = arith.constant 0 : i32
    return %c0_i32, %arg1 : i32, i32
  }
  func.func @transform_5(%arg0: i32, %arg1: i32) -> (i32, i32) {
    %c0_i32 = arith.constant 0 : i32
    %c0_i32_0 = arith.constant 0 : i32
    return %arg1, %c0_i32 : i32, i32
  }
  func.func @transform_6(%arg0: i32, %arg1: i32) -> (i32, i32) {
    %c0_i32 = arith.constant 0 : i32
    %c0_i32_0 = arith.constant 0 : i32
    return %arg0, %c0_i32 : i32, i32
  }
}

</mosaic_0001>

<bundles_post_ra>
// kernel: latent_decoder_forward.2
= control target key start
LH: loop header
LB: loop body
LE: loop exit
PB: predicated region body
PF: predicated region fallthrough
CT: control target
= control target key end

     0   :  { %v715_v0 = vmov 0.0   ;;  %vm716_vm0 = vmmov 0   ;;  %vm45_vm1 = vcmask 261120   ;;  %v717_v25 = vmov 0   ;;  %s887_s1 = inlined_call_operand.vmem [shape: bf16[32,80], index: 1, kind: input, shape index: {}]   ;;  %s888_s3 = inlined_call_operand.vmem [shape: bf16[80,896], index: 3, kind: input, shape index: {}]   ;;  %s889_s0 = inlined_call_operand.vmem [shape: bf16[2,32], index: 0, kind: input, shape index: {}]   ;;  %s890_s2 = inlined_call_operand.vmem [shape: f32[1,80], index: 2, kind: input, shape index: {}]   ;;  %s891_s4 = inlined_call_operand.vmem [shape: f32[1,896], index: 4, kind: input, shape index: {}]   ;;  %s892_s5 = inlined_call_operand.vmem [shape: bf16[2,896], index: 5, kind: output, shape index: {}]  }
   0x1   :  { %637 = vmatprep.subr.bf16.mxu0 %v715_v0  ;;  %v663_v1 = vld [vmem:[%s887_s1] sm:$0xff]   ;;  %641 = vmatprep.mubr.msk.bf16.mxu0 %vm716_vm0, %v715_v0  ;;  %v664_v2 = vld [vmem:[%s887_s1 + $0x8] sm:$0xff]   ;;  %v671_v7 = vld [vmem:[%s888_s3 + $0x3c] ss:$28 sps:$4 sm:$0xff]   ;;  %vm347_vm2 = vcmask 654336   ;;  %v132_v47 = vlaneseq }
   0x2   :  { %638 = vmatpush3.bf16.msra.mxu0 %v663_v1  ;;  %v665_v3 = vld [vmem:[%s888_s3 + $0x4] ss:$28 sps:$4 sm:$0xff]   ;;  %v669_v5 = vld [vmem:[%s888_s3 + $0xc] ss:$28 sps:$4 sm:$0xff]   ;;  %v676_v10 = vld [vmem:[%s888_s3 + $0x38] ss:$28 sps:$4 sm:$0xff]   ;;  %383 = vmatprep.mubr.bf16.mxu1 %v717_v25 }
   0x3   :  { %639 = vmatprep.subr.bf16.mxu0 %v715_v0  ;;  %v21_v4 = vld [vmem:[%s889_s0] sm:$0x1]  ;;  %351 = vmatprep.subr.bf16.mxu1 %v665_v3  ;;  %v667_v8 = vld [vmem:[%s888_s3 + $0x8] ss:$28 sps:$4 sm:$0xff]   ;;  %v677_v11 = vld [vmem:[%s888_s3 + $0x74] ss:$28 sps:$4 sm:$0xff]  }
   0x4   :  { %v670_v6 = vld [vmem:[%s888_s3] ss:$28 sps:$4 sm:$0xff]   ;;  %v682_v14 = vld [vmem:[%s888_s3 + $0x70] ss:$28 sps:$4 sm:$0xff]   ;;  %v679_v16 = vld [vmem:[%s888_s3 + $0x78] ss:$28 sps:$4 sm:$0xff]  }
   0x5   :  { %352 = vmatpush1.bf16.msra.mxu1 %v670_v6  ;;  %v675_v9 = vld [vmem:[%s888_s3 + $0x44] ss:$28 sps:$4 sm:$0xff]   ;;  %v681_v13 = vld [vmem:[%s888_s3 + $0x7c] ss:$28 sps:$4 sm:$0xff]   ;;  %v683_v15 = vld [vmem:[%s888_s3 + $0xac] ss:$28 sps:$4 sm:$0xff]  }
   0x6   :  { %640 = vmatpush3.bf16.msra.mxu0 %v664_v2  ;;  %353 = vmatprep.subr.bf16.mxu1 %v671_v7  ;;  %v673_v12 = vld [vmem:[%s888_s3 + $0x40] ss:$28 sps:$4 sm:$0xff]   ;;  %v687_v17 = vld [vmem:[%s888_s3 + $0xb4] ss:$28 sps:$4 sm:$0xff]   ;;  %v688_v18 = vld [vmem:[%s888_s3 + $0xa8] ss:$28 sps:$4 sm:$0xff]  }
   0x7   :  { %392 = vmatprep.subr.bf16.mxu0 %v669_v5  ;;  %v685_v19 = vld [vmem:[%s888_s3 + $0xb0] ss:$28 sps:$4 sm:$0xff]   ;;  %v689_v20 = vld [vmem:[%s888_s3 + $0xe4] ss:$28 sps:$4 sm:$0xff]   ;;  %v698_v32 = vld [vmem:[%s888_s3 + $0x18] ss:$28 sps:$4 sm:$0xff]  }
   0x8   :  { %v693_v21 = vld [vmem:[%s888_s3 + $0xec] ss:$28 sps:$4 sm:$0xff]   ;;  %v694_v23 = vld [vmem:[%s888_s3 + $0xe0] ss:$28 sps:$4 sm:$0xff]   ;;  %v697_v24 = vld [vmem:[%s888_s3 + $0x14] ss:$28 sps:$4 sm:$0xff]  }
   0x9   :  { %642 = vmatmul.mubr.msk.bf16.vlgmr.msra.gmra.mrb[0].mxu0 %vm45_vm1, %v21_v4  ;;  %354 = vmatpush1.bf16.msra.mxu1 %v676_v10  ;;  %v691_v22 = vld [vmem:[%s888_s3 + $0xe8] ss:$28 sps:$4 sm:$0xff]   ;;  %v582_v26 = vld [vmem:[%s890_s2] ss:$0 sm:$0xff]  ;;  %v695_v31 = vld [vmem:[%s888_s3 + $0x10] ss:$28 sps:$4 sm:$0xff]  }
   0xa   :  { %393 = vmatpush1.bf16.msra.mxu0 %v667_v8  ;;  %355 = vmatprep.subr.bf16.mxu1 %v677_v11  ;;  %v701_v35 = vld [vmem:[%s888_s3 + $0x4c] ss:$28 sps:$4 sm:$0xff]   ;;  %v705_v38 = vld [vmem:[%s888_s3 + $0x84] ss:$28 sps:$4 sm:$0xff]   ;;  %v709_v41 = vld [vmem:[%s888_s3 + $0xbc] ss:$28 sps:$4 sm:$0xff]  }
   0xb   :  { %394 = vmatprep.subr.bf16.mxu0 %v675_v9  ;;  %424 = vmatprep.mubr.bf16.mxu0 %v717_v25  ;;  %v699_v36 = vld [vmem:[%s888_s3 + $0x48] ss:$28 sps:$4 sm:$0xff]   ;;  %v702_v37 = vld [vmem:[%s888_s3 + $0x50] ss:$28 sps:$4 sm:$0xff]   ;;  %v703_v39 = vld [vmem:[%s888_s3 + $0x80] ss:$28 sps:$4 sm:$0xff]  }
   0xc   :  { %v706_v40 = vld [vmem:[%s888_s3 + $0x88] ss:$28 sps:$4 sm:$0xff]   ;;  %v707_v42 = vld [vmem:[%s888_s3 + $0xb8] ss:$28 sps:$4 sm:$0xff]   ;;  %v710_v43 = vld [vmem:[%s888_s3 + $0xc0] ss:$28 sps:$4 sm:$0xff]  }
   0xd   :  { %356 = vmatpush1.bf16.msra.mxu1 %v682_v14  ;;  %v713_v44 = vld [vmem:[%s888_s3 + $0xf4] ss:$28 sps:$4 sm:$0xff]   ;;  %v133_v48 = vshrl.u32 %v132_v47, 7  ;;  %v130_v51 = vld [vmem:[%s891_s4] sm:$0xff]  ;;  %v718_v53 = vmov 1966171168  }
   0xe   :  { %395 = vmatpush1.bf16.msra.mxu0 %v673_v12  ;;  %357 = vmatprep.subr.bf16.mxu1 %v683_v15  ;;  %v711_v45 = vld [vmem:[%s888_s3 + $0xf0] ss:$28 sps:$4 sm:$0xff]   ;;  %v714_v46 = vld [vmem:[%s888_s3 + $0xf8] ss:$28 sps:$4 sm:$0xff]   ;;  %v532_v54 = vunpack.c.l.s4 %v718_v53 }
   0xf   :  { %396 = vmatprep.subr.bf16.mxu0 %v681_v13  ;;  %v134_v49 = vsub.s32 0, %v133_v48  ;;  %v142_v50 = vsub.s32 2, %v133_v48  ;;  %v138_v52 = vsub.s32 1, %v133_v48  ;;  %v146_v55 = vsub.s32 3, %v133_v48 }
  0x10   :  { %v533_v59 = vunpack.c.0.s8 %v532_v54  ;;  %v150_v15 = vsub.s32 4, %v133_v48 }
  0x11   :  { %358 = vmatpush1.bf16.msra.mxu1 %v688_v18  ;;  %v135_v56 = vrot.slane %v130_v51, %v134_v49  ;;  %v143_v57 = vrot.slane %v130_v51, %v142_v50  ;;  %v139_v58 = vrot.slane %v130_v51, %v138_v52  ;;  %v147_v60 = vrot.slane %v130_v51, %v146_v55 }
  0x12   :  { %397 = vmatpush1.bf16.msra.mxu0 %v679_v16  ;;  %359 = vmatprep.subr.bf16.mxu1 %v689_v20  ;;  %v536_v4 = vsub.s32 %v533_v59, %v133_v48  ;;  %v158_v16 = vsub.s32 6, %v133_v48  ;;  %v151_v18 = vrot.slane %v130_v51, %v150_v15 }
  0x13   :  { %398 = vmatprep.subr.bf16.mxu0 %v687_v17  ;;  %v154_v17 = vsub.s32 5, %v133_v48 }
  0x15   :  { %360 = vmatpush1.bf16.msra.mxu1 %v694_v23  ;;  %v155_v20 = vrot.slane %v130_v51, %v154_v17 }
  0x16   :  { %399 = vmatpush1.bf16.msra.mxu0 %v685_v19  ;;  %433 = vmatprep.subr.bf16.mxu1 %v697_v24  ;;  %v159_v19 = vrot.slane %v130_v51, %v158_v16 }
  0x17   :  { %400 = vmatprep.subr.bf16.mxu0 %v693_v21 }
  0x1a   :  { %401 = vmatpush1.bf16.msra.mxu0 %v691_v22 }
  0x1b   :  { %645 = vmatprep.subr.bf16.mxu0 %v715_v0 }
  0xdc   :  { %v83_v27 = vpop.f32.mrb[0].mxu0 }
  0xdd   :  { %v84_v28 = vadd.f32 %v582_v26, %v83_v27  ;;  %v643_v29 = vpop.f32.mrb[1].mxu0 }
  0xde   :  { %v86_v30 = vpop.f32.mrb[2].mxu0 }
  0xdf   :  { %v89_v33 = vpack.c.bf16 %v84_v28, %v84_v28  ;;  %v644_v34 = vpop.f32.mrb[3].mxu0 }
  0xe1   :  { %621 = vmatmul.mubr.msk.bf16.vlgmr.msra.gmra.mrb[0].mxu1 %vm347_vm2, %v89_v33  ;;  %622 = vmatmul.mubr.msk.bf16.vlgmr.msra.gmra.mrb[4].mxu0 %vm347_vm2, %v89_v33 }
  0xe2   :  { %434 = vmatpush1.bf16.msra.mxu1 %v695_v31  ;;  %646 = vmatpush3.bf16.msra.mxu0 %v698_v32 }
  0xe3   :  { %435 = vmatprep.subr.bf16.mxu1 %v701_v35  ;;  %647 = vmatprep.subr.bf16.mxu0 %v715_v0 }
  0xe4   :  { %465 = vmatprep.mubr.bf16.mxu1 %v717_v25  ;;  %655 = vmatprep.mubr.msk.bf16.mxu0 %vm716_vm0, %v715_v0 }
  0xe6   :  { %436 = vmatpush1.bf16.msra.mxu1 %v699_v36  ;;  %648 = vmatpush3.bf16.msra.mxu0 %v702_v37 }
  0xe7   :  { %437 = vmatprep.subr.bf16.mxu1 %v705_v38  ;;  %649 = vmatprep.subr.bf16.mxu0 %v715_v0 }
  0xea   :  { %438 = vmatpush1.bf16.msra.mxu1 %v703_v39  ;;  %650 = vmatpush3.bf16.msra.mxu0 %v706_v40 }
  0xeb   :  { %439 = vmatprep.subr.bf16.mxu1 %v709_v41  ;;  %651 = vmatprep.subr.bf16.mxu0 %v715_v0 }
  0xee   :  { %440 = vmatpush1.bf16.msra.mxu1 %v707_v42  ;;  %652 = vmatpush3.bf16.msra.mxu0 %v710_v43 }
  0xef   :  { %441 = vmatprep.subr.bf16.mxu1 %v713_v44  ;;  %653 = vmatprep.subr.bf16.mxu0 %v715_v0 }
  0xf2   :  { %442 = vmatpush1.bf16.msra.mxu1 %v711_v45  ;;  %654 = vmatpush3.bf16.msra.mxu0 %v714_v46 }
  0xf5   :  { %623 = vmatmul.mubr.msk.bf16.vlgmr.msra.gmra.mrb[4].mxu1 %vm347_vm2, %v89_v33  ;;  %656 = vmatmul.mubr.msk.bf16.vlgmr.msra.gmra.mrb[8].mxu0 %vm347_vm2, %v89_v33 }
 0x1b4   :  { %v385_v61 = vpop.f32.mrb[0].mxu1  ;;  %v426_v62 = vpop.f32.mrb[4].mxu0 }
 0x1b5   :  { %v386_v63 = vadd.f32 %v385_v61, %v135_v56  ;;  %v427_v0 = vadd.f32 %v426_v62, %v143_v57  ;;  %v387_v1 = vpop.f32.mrb[1].mxu1  ;;  %v428_v2 = vpop.f32.mrb[5].mxu0 }
 0x1b6   :  { %v388_v3 = vadd.f32 %v387_v1, %v139_v58  ;;  %v429_v5 = vadd.f32 %v428_v2, %v147_v60  ;;  %v389_v6 = vpop.f32.mrb[2].mxu1  ;;  %v430_v7 = vpop.f32.mrb[6].mxu0 }
 0x1b7   :  { %v390_v8 = vpop.f32.mrb[3].mxu1  ;;  %v431_v9 = vpop.f32.mrb[7].mxu0 }
 0x1b8   :  { %v625_v10 = vpack.c.bf16 %v388_v3, %v386_v63  ;;  %v626_v11 = vpack.c.bf16 %v429_v5, %v427_v0 }
 0x1ba   :  { %v537_v12 = vrot.slane %v625_v10, %v536_v4  ;;  %v544_v13 = vrot.slane %v626_v11, %v536_v4 }
 0x1bc   :  { %v559_v14 = vcombine.low %v537_v12, %v544_v13 }
 0x1be   :  { %v567_v37 = vrot.slane %v559_v14, %v536_v4 }
 0x1c8   :  { %v467_v21 = vpop.f32.mrb[4].mxu1  ;;  %v508_v22 = vpop.f32.mrb[8].mxu0 }
 0x1c9   :  { %v468_v23 = vadd.f32 %v467_v21, %v151_v18  ;;  %v509_v24 = vadd.f32 %v508_v22, %v159_v19  ;;  %v469_v25 = vpop.f32.mrb[5].mxu1  ;;  %v657_v26 = vpop.f32.mrb[9].mxu0 }
 0x1ca   :  { %v470_v27 = vadd.f32 %v469_v25, %v155_v20  ;;  %v471_v28 = vpop.f32.mrb[6].mxu1  ;;  %v511_v29 = vpop.f32.mrb[10].mxu0 }
 0x1cb   :  { %v520_v30 = vpack.c.bf16 %v509_v24, %v509_v24  ;;  %v472_v31 = vpop.f32.mrb[7].mxu1  ;;  %v658_v32 = vpop.f32.mrb[11].mxu0 }
 0x1cc   :  { %v627_v33 = vpack.c.bf16 %v470_v27, %v468_v23 }
 0x1cd   :  { %v558_v34 = vrot.slane %v520_v30, %v536_v4 }
 0x1ce   :  { %v551_v35 = vrot.slane %v627_v33, %v536_v4 }
 0x1d0   :  { %v560_v36 = vcombine.low %v551_v35, %v558_v34 }
 0x1d2   :  { %v574_v38 = vrot.slane %v560_v36, %v536_v4 }
 0x1d4   :  { %v575_v39 = vcombine.low %v567_v37, %v574_v38 }
 0x1d6   :  { %577 = vst [vmem:[%s892_s5] sm:$0x7f] %v575_v39 }

// kernel: latent_decoder_forward.3
= control target key start
LH: loop header
LB: loop body
LE: loop exit
PB: predicated region body
PF: predicated region fallthrough
CT: control target
= control target key end

     0   :  { %v542_v0 = vmov 0.0   ;;  %vm543_vm0 = vmmov 0   ;;  %vm98_vm1 = vcmask 1041408   ;;  %vm94_vm2 = vcmask 818176   ;;  %s704_s1 = inlined_call_operand.vmem [shape: bf16[100,128], index: 1, kind: input, shape index: {}]   ;;  %s705_s0 = inlined_call_operand.vmem [shape: bf16[16,100], index: 0, kind: input, shape index: {}]   ;;  %s706_s4 = inlined_call_operand.vmem [shape: bf16[128,128], index: 4, kind: input, shape index: {}]   ;;  %s707_s2 = inlined_call_operand.vmem [shape: f32[1,128], index: 2, kind: input, shape index: {}]   ;;  %s708_s5 = inlined_call_operand.vmem [shape: bf16[128,128], index: 5, kind: input, shape index: {}]   ;;  %s709_s3 = inlined_call_operand.vmem [shape: f32[1,128], index: 3, kind: input, shape index: {}]   ;;  %s710_s6 = inlined_call_operand.vmem [shape: f32[16,128], index: 6, kind: output, shape index: {}]  }
   0x1   :  { %454 = vmatprep.subr.bf16.mxu0 %v542_v0  ;;  %v514_v1 = vld [vmem:[%s704_s1] sm:$0xff]   ;;  %468 = vmatprep.mubr.msk.bf16.mxu0 %vm543_vm0, %v542_v0  ;;  %v515_v2 = vld [vmem:[%s704_s1 + $0x8] sm:$0xff]   ;;  %v516_v3 = vld [vmem:[%s704_s1 + $0x10] sm:$0xff]  }
   0x2   :  { %472 = vmatprep.subr.bf16.mxu1 %v542_v0  ;;  %488 = vmatprep.mubr.msk.bf16.mxu1 %vm543_vm0, %v542_v0  ;;  %v517_v4 = vld [vmem:[%s704_s1 + $0x18] sm:$0xff]   ;;  %v518_v5 = vld [vmem:[%s704_s1 + $0x20] sm:$0xff]   ;;  %v519_v6 = vld [vmem:[%s704_s1 + $0x28] sm:$0xff]  }
   0x3   :  { %455 = vmatpush3.bf16.msra.mxu0 %v514_v1  ;;  %v520_v7 = vld [vmem:[%s704_s1 + $0x30] ss:$0 sps:$4 sm:$0x33]   ;;  %v521_v9 = vld [vmem:[%s705_s0] sm:$0xff]   ;;  %v523_v11 = vld [vmem:[%s706_s4 + $0x8] sm:$0xff]  }
   0x4   :  { %456 = vmatprep.subr.bf16.mxu0 %v542_v0  ;;  %v100_v8 = vsel %vm98_vm1, %v520_v7, 0  ;;  %v522_v10 = vld [vmem:[%s706_s4] sm:$0xff]   ;;  %v524_v21 = vld [vmem:[%s706_s4 + $0x10] sm:$0xff]   ;;  %v525_v22 = vld [vmem:[%s706_s4 + $0x18] sm:$0xff]  }
   0x5   :  { %473 = vmatpush3.bf16.msra.mxu1 %v522_v10  ;;  %v401_v12 = vld [vmem:[%s707_s2] ss:$0 sm:$0xff]  ;;  %v527_v24 = vld [vmem:[%s706_s4 + $0x28] sm:$0xff]   ;;  %v528_v25 = vld [vmem:[%s706_s4 + $0x30] sm:$0xff]  }
   0x6   :  { %474 = vmatprep.subr.bf16.mxu1 %v542_v0  ;;  %v526_v23 = vld [vmem:[%s706_s4 + $0x20] sm:$0xff]   ;;  %v529_v26 = vld [vmem:[%s706_s4 + $0x38] sm:$0xff]   ;;  %v531_v28 = vld [vmem:[%s708_s5 + $0x8] sm:$0xff]  }
   0x7   :  { %457 = vmatpush3.bf16.msra.mxu0 %v515_v2  ;;  %v530_v27 = vld [vmem:[%s708_s5] sm:$0xff]   ;;  %v532_v29 = vld [vmem:[%s708_s5 + $0x10] sm:$0xff]   ;;  %v533_v30 = vld [vmem:[%s708_s5 + $0x18] sm:$0xff]  }
   0x8   :  { %458 = vmatprep.subr.bf16.mxu0 %v542_v0  ;;  %v534_v31 = vld [vmem:[%s708_s5 + $0x20] sm:$0xff]   ;;  %v535_v32 = vld [vmem:[%s708_s5 + $0x28] sm:$0xff]   ;;  %v536_v47 = vld [vmem:[%s708_s5 + $0x30] sm:$0xff]  }
   0x9   :  { %475 = vmatpush3.bf16.msra.mxu1 %v523_v11  ;;  %v411_v42 = vld [vmem:[%s709_s3] ss:$0 sm:$0xff]  ;;  %v537_v48 = vld [vmem:[%s708_s5 + $0x38] sm:$0xff]  }
   0xa   :  { %476 = vmatprep.subr.bf16.mxu1 %v542_v0 }
   0xb   :  { %459 = vmatpush3.bf16.msra.mxu0 %v516_v3 }
   0xc   :  { %460 = vmatprep.subr.bf16.mxu0 %v542_v0 }
   0xd   :  { %477 = vmatpush3.bf16.msra.mxu1 %v524_v21 }
   0xe   :  { %478 = vmatprep.subr.bf16.mxu1 %v542_v0 }
   0xf   :  { %461 = vmatpush3.bf16.msra.mxu0 %v517_v4 }
  0x10   :  { %462 = vmatprep.subr.bf16.mxu0 %v542_v0 }
  0x11   :  { %479 = vmatpush3.bf16.msra.mxu1 %v525_v22 }
  0x12   :  { %480 = vmatprep.subr.bf16.mxu1 %v542_v0 }
  0x13   :  { %463 = vmatpush3.bf16.msra.mxu0 %v518_v5 }
  0x14   :  { %464 = vmatprep.subr.bf16.mxu0 %v542_v0 }
  0x15   :  { %481 = vmatpush3.bf16.msra.mxu1 %v526_v23 }
  0x16   :  { %482 = vmatprep.subr.bf16.mxu1 %v542_v0 }
  0x17   :  { %465 = vmatpush3.bf16.msra.mxu0 %v519_v6 }
  0x18   :  { %466 = vmatprep.subr.bf16.mxu0 %v542_v0 }
  0x19   :  { %483 = vmatpush3.bf16.msra.mxu1 %v527_v24 }
  0x1a   :  { %484 = vmatprep.subr.bf16.mxu1 %v542_v0 }
  0x1b   :  { %467 = vmatpush3.bf16.msra.mxu0 %v100_v8 }
  0x1c   :  { %492 = vmatprep.subr.bf16.mxu0 %v542_v0 }
  0x1d   :  { %485 = vmatpush3.bf16.msra.mxu1 %v528_v25 }
  0x1e   :  { %469 = vmatmul.mubr.msk.bf16.vlgmr.msra.gmra.mrb[0].mxu0 %vm94_vm2, %v521_v9  ;;  %486 = vmatprep.subr.bf16.mxu1 %v542_v0 }
  0x1f   :  { %508 = vmatprep.mubr.msk.bf16.mxu0 %vm543_vm0, %v542_v0  ;;  %493 = vmatpush3.bf16.msra.mxu0 %v530_v27 }
  0x20   :  { %494 = vmatprep.subr.bf16.mxu0 %v542_v0 }
  0x21   :  { %487 = vmatpush3.bf16.msra.mxu1 %v529_v26 }
  0x23   :  { %495 = vmatpush3.bf16.msra.mxu0 %v531_v28 }
  0x24   :  { %496 = vmatprep.subr.bf16.mxu0 %v542_v0 }
  0x27   :  { %497 = vmatpush3.bf16.msra.mxu0 %v532_v29 }
  0x28   :  { %498 = vmatprep.subr.bf16.mxu0 %v542_v0 }
  0x2b   :  { %499 = vmatpush3.bf16.msra.mxu0 %v533_v30 }
  0x2c   :  { %500 = vmatprep.subr.bf16.mxu0 %v542_v0 }
  0x2f   :  { %501 = vmatpush3.bf16.msra.mxu0 %v534_v31 }
  0x30   :  { %502 = vmatprep.subr.bf16.mxu0 %v542_v0 }
  0x33   :  { %503 = vmatpush3.bf16.msra.mxu0 %v535_v32 }
  0x34   :  { %504 = vmatprep.subr.bf16.mxu0 %v542_v0 }
  0x37   :  { %505 = vmatpush3.bf16.msra.mxu0 %v536_v47 }
  0x38   :  { %506 = vmatprep.subr.bf16.mxu0 %v542_v0 }
  0x3b   :  { %507 = vmatpush3.bf16.msra.mxu0 %v537_v48 }
  0xf1   :  { %v136_v13 = vpop.f32.mrb[0].mxu0 }
  0xf2   :  { %v629_v14 = vadd.f32 %v401_v12, %v136_v13  ;;  %v470_v15 = vpop.f32.mrb[1].mxu0 }
  0xf3   :  { %v139_v16 = vpop.f32.mrb[2].mxu0 }
  0xf4   :  { %v631_v17 = vadd.f32 %v401_v12, %v139_v16  ;;  %v471_v18 = vpop.f32.mrb[3].mxu0  ;;  %v145_v19 = vmul.f32 %v629_v14, %v629_v14 }
  0xf6   :  { %147 = vadd.xlane.f32.xlu0 %v145_v19  ;;  %v146_v20 = vmul.f32 %v631_v17, %v631_v17 }
  0xfa   :  { %149 = vadd.xlane.f32.xlu0 %v146_v20 }
 0x183   :  { %v148_v33 = vpop.xlane.xlu0 %147 }
 0x184   :  { %v151_v34 = vmul.f32 0.015625, %v148_v33 }
 0x186   :  { %v153_v35 = vadd.f32 1e-06, %v151_v34 }
 0x187   :  { %v150_v36 = vpop.xlane.xlu0 %149 }
 0x188   :  { %538 = vrsqrt.f32 %v153_v35  ;;  %v152_v37 = vmul.f32 0.015625, %v150_v36 }
 0x18a   :  { %v154_v38 = vadd.f32 1e-06, %v152_v37 }
 0x18c   :  { %540 = vrsqrt.f32 %v154_v38 }
 0x192   :  { %v539_v39 = vpop.eup %538 }
 0x193   :  { %v157_v40 = vmul.f32 %v539_v39, %v629_v14 }
 0x195   :  { %v166_v44 = vmul.f32 %v411_v42, %v157_v40 }
 0x196   :  { %v541_v41 = vpop.eup %540 }
 0x197   :  { %v158_v43 = vmul.f32 %v541_v41, %v631_v17 }
 0x199   :  { %v167_v45 = vmul.f32 %v411_v42, %v158_v43 }
 0x19b   :  { %v168_v46 = vpack.c.bf16 %v167_v45, %v166_v44 }
 0x19d   :  { %489 = vmatmul.mubr.bf16.vlgmr.msra.gmra.mrb[0].mxu1 %v168_v46 }
 0x270   :  { %v269_v49 = vpop.f32.mrb[0].mxu1 }
 0x271   :  { %v490_v50 = vpop.f32.mrb[1].mxu1  ;;  %v276_v52 = vmax.f32 %v269_v49, 0.0 }
 0x272   :  { %v272_v51 = vpop.f32.mrb[2].mxu1 }
 0x273   :  { %v277_v53 = vmax.f32 %v272_v51, 0.0  ;;  %v491_v54 = vpop.f32.mrb[3].mxu1 }
 0x275   :  { %v278_v55 = vpack.c.bf16 %v277_v53, %v276_v52 }
 0x277   :  { %509 = vmatmul.mubr.bf16.vlgmr.msra.gmra.mrb[4].mxu0 %v278_v55 }
 0x34a   :  { %v379_v56 = vpop.f32.mrb[4].mxu0 }
 0x34b   :  { %v386_v57 = vadd.f32 %v379_v56, %v629_v14  ;;  %v510_v58 = vpop.f32.mrb[5].mxu0 }
 0x34c   :  { %v382_v59 = vpop.f32.mrb[6].mxu0 }
 0x34d   :  { %395 = vst [vmem:[%s710_s6] sm:$0xff] %v386_v57  ;;  %v387_v60 = vadd.f32 %v382_v59, %v631_v17  ;;  %v511_v61 = vpop.f32.mrb[7].mxu0 }
 0x34f   :  { %396 = vst [vmem:[%s710_s6 + $0x8] sm:$0xff] %v387_v60 }

</bundles_post_ra>
